<compile_context>
chip_gen: v5e
topology: v5e:2x2
jax: 0.10.0
libtpu: 0.0.40
codegen_flags: <defaults>
</compile_context>

<pallas_src>
import numpy as np
import jax
import jax.numpy as jnp
from jax.experimental import pallas as pl
from jax.experimental.pallas import tpu as pltpu

# ---------------------------------------------------------------------------
# Problem sizes implied by the module: fc expects 289 = 17*17 features, and
# AvgPool2d(4,4,stride=2) maps 36 -> 17, so the conv-style input is (B,1,36,36).
# ---------------------------------------------------------------------------
B = 2
C, H, W = 1, 36, 36
KH = KW = 4
SH = SW = 2
OH = (H - KH) // SH + 1   # 17
OW = (W - KW) // SW + 1   # 17
FLAT_IN = C * H * W       # 1296
FLAT_POOL = C * OH * OW   # 289
HID = 16
OUT = 1
NEG_SLOPE = 0.01          # nn.LeakyReLU default


def _build_pool_matrix() -> np.ndarray:
    """Constant matrix M (1296, 289): pooled_flat = x_flat @ M (host-side only)."""
    m = np.zeros((FLAT_IN, FLAT_POOL), dtype=np.float64)
    inv = 1.0 / (KH * KW)
    for oh in range(OH):
        for ow in range(OW):
            col = oh * OW + ow
            for di in range(KH):
                for dj in range(KW):
                    row = (SH * oh + di) * W + (SW * ow + dj)
                    m[row, col] += inv
    return m


# ---------------------------------------------------------------------------
# Pallas kernel: elementwise combine + one fused lane-dense matmul + LeakyReLU + head.
# ---------------------------------------------------------------------------
def regressor_kernel(scalars_ref, x_ref, wf_t_ref, pb_ref, out_ref):
    gamma = scalars_ref[0]                                      # SMEM scalar reads
    b2 = scalars_ref[1]
    # P = P_L + gamma * P_G   (flattened, one batch tile)
    p = x_ref[0] + gamma * x_ref[1]                             # (TM, 1296)
    # Fused AvgPool(4,4,s=2) + Linear(289->16): contract against the lane-dense
    # transposed weight (16, 1296) -- native transposed-RHS on the MXU.
    h = jax.lax.dot_general(
        p, wf_t_ref[...],
        dimension_numbers=(((1,), (1,)), ((), ())),
        preferred_element_type=jnp.float32)                     # (TM, 16)
    h = h + pb_ref[0:1, :]                                      # + b1
    # LeakyReLU(0.01)
    h = jnp.where(h >= 0.0, h, NEG_SLOPE * h)
    # Dropout(p=0.1): identity in eval/inference mode.
    # Linear(16 -> 1), emitted lane-dense as a (1, TM) row block.
    out_ref[...] = jax.lax.dot_general(
        pb_ref[1:2, :], h,
        dimension_numbers=(((1,), (1,)), ((), ())),
        preferred_element_type=jnp.float32) + b2                # (1, TM)


def regressor_forward(p_l, p_g, kernel_params, *, block_b=256):
    """p_l, p_g: (B, C, H, W) float32.  kernel_params from prepare_kernel_params.
    Returns (B, 1) scores.  block_b: max batch tile (v5e 128-256, v7x <=512,
    v6e up to 1024)."""
    scalars, wf_t, pb = kernel_params
    bsz = p_l.shape[0]

    # Collapse the two activation inputs into one DMA: (2, B, 1296).
    x = jnp.stack([p_l.reshape(bsz, -1), p_g.reshape(bsz, -1)]).astype(jnp.float32)

    if bsz <= block_b:
        tm, b_pad = bsz, bsz
    else:
        tm = ((block_b + 7) // 8) * 8                  # keep (8,128)-friendly tiles
        b_pad = ((bsz + tm - 1) // tm) * tm
        if b_pad != bsz:
            x = jnp.pad(x, ((0, 0), (0, b_pad - bsz), (0, 0)))
    grid = (b_pad // tm,)

    flops = 2 * b_pad * FLAT_IN * HID + 2 * b_pad * FLAT_IN + 4 * b_pad * HID
    bytes_accessed = 4 * (2 * b_pad * FLAT_IN          # stacked activations in
                          + HID * FLAT_IN              # fused transposed weight
                          + 2 * HID + 2                # b1/w2 tile, gamma/b2 scalars
                          + b_pad)                     # lane-dense output
    cost = pl.CostEstimate(flops=flops, transcendentals=0,
                           bytes_accessed=bytes_accessed)

    out = pl.pallas_call(
        regressor_kernel,
        out_shape=jax.ShapeDtypeStruct((1, b_pad), jnp.float32),
        grid=grid,
        in_specs=[
            pl.BlockSpec(memory_space=pltpu.MemorySpace.SMEM),          # gamma, b2
            pl.BlockSpec((2, tm, FLAT_IN), lambda i: (0, i, 0)),        # stacked x
            pl.BlockSpec((HID, FLAT_IN), lambda i: (0, 0)),             # wf_t (resident)
            pl.BlockSpec((2, HID), lambda i: (0, 0)),                   # b1 / w2 (resident)
        ],
        out_specs=pl.BlockSpec((1, tm), lambda i: (0, i)),              # lane-dense scores
        compiler_params=pltpu.CompilerParams(dimension_semantics=("parallel",)),
        cost_estimate=cost,
    )(scalars, x, wf_t, pb)

    return out[0, :bsz].reshape(bsz, 1)


def init_params(key):
    """Raw (unfused) parameters, matching shapes in Regressor.__init__."""
    k1, k2, k3, k4 = jax.random.split(key, 4)
    gamma = jnp.zeros((1, 1), dtype=jnp.float32)               # torch.tensor(0.0)
    # nn.Linear-style uniform init, stored transposed as (in, out) for x @ W.
    lim1 = 1.0 / np.sqrt(FLAT_POOL)
    w1 = jax.random.uniform(k1, (FLAT_POOL, HID), jnp.float32, -lim1, lim1)
    b1 = jax.random.uniform(k2, (1, HID), jnp.float32, -lim1, lim1)
    lim2 = 1.0 / np.sqrt(HID)
    w2 = jax.random.uniform(k3, (HID, OUT), jnp.float32, -lim2, lim2)
    b2 = jax.random.uniform(k4, (1, OUT), jnp.float32, -lim2, lim2)
    return gamma, w1, b1, w2, b2


def prepare_kernel_params(raw_params):
    """One-time host-side fold and packing.
    Wf^T = (pool_m @ W1)^T stored lane-dense as (16, 1296) (fold done in float64);
    b1 + w2-row packed into a (2, 16) tile; gamma + b2 packed into a (2,) SMEM array."""
    gamma, w1, b1, w2, b2 = raw_params
    pool_m = _build_pool_matrix()                                       # (1296, 289) f64
    wf_t = jnp.asarray((pool_m @ np.asarray(w1, dtype=np.float64)).T,
                       dtype=jnp.float32)                               # (16, 1296)
    pb = jnp.concatenate([b1.reshape(1, HID), w2.reshape(1, HID)],
                         axis=0).astype(jnp.float32)                    # (2, 16)
    scalars = jnp.stack([gamma.reshape(()), b2.reshape(())]).astype(jnp.float32)  # (2,)
    return scalars, wf_t, pb


def reference_forward(p_l, p_g, raw_params):
    """Plain-JAX reference (eval mode, unfused) for a correctness spot-check."""
    gamma, w1, b1, w2, b2 = raw_params
    p = p_l + gamma[0, 0] * p_g                                # (B,1,36,36)
    # avg_pool 4x4 stride 2
    win = jnp.stack([p[:, :, SH * oh:SH * oh + KH, :] for oh in range(OH)], axis=2)
    win = jnp.stack([win[:, :, :, :, SW * ow:SW * ow + KW] for ow in range(OW)], axis=3)
    pooled = jnp.mean(win, axis=(4, 5))                        # (B,1,17,17)
    flat = pooled.reshape(p.shape[0], -1)                      # (B,289)
    h = flat @ w1 + b1
    h = jnp.where(h >= 0.0, h, NEG_SLOPE * h)
    return h @ w2 + b2


if __name__ == "__main__":
    key = jax.random.PRNGKey(0)
    k_in1, k_in2, k_par = jax.random.split(key, 3)

    p_l = jax.random.normal(k_in1, (B, C, H, W), dtype=jnp.float32)
    p_g = jax.random.normal(k_in2, (B, C, H, W), dtype=jnp.float32)

    # Case 1: module's own init (gamma = 0.0).
    raw_params = init_params(k_par)
    kernel_params = prepare_kernel_params(raw_params)
    score = jax.block_until_ready(regressor_forward(p_l, p_g, kernel_params))
    ref = reference_forward(p_l, p_g, raw_params)
    # Tolerance: MXU default-precision rounding + the 1296-vs-289-term reduction
    # reorder from the pool fold make 1e-4 marginal (per review); 1e-3 is robust.
    np.testing.assert_allclose(np.asarray(score), np.asarray(ref),
                               rtol=1e-3, atol=1e-3)

    # Case 2: nonzero gamma so the P_L + gamma * P_G path is actually exercised.
    gamma_nz = jnp.full((1, 1), 0.7, dtype=jnp.float32)
    raw_nz = (gamma_nz,) + raw_params[1:]
    score_nz = jax.block_until_ready(
        regressor_forward(p_l, p_g, prepare_kernel_params(raw_nz)))
    ref_nz = reference_forward(p_l, p_g, raw_nz)
    np.testing.assert_allclose(np.asarray(score_nz), np.asarray(ref_nz),
                               rtol=1e-3, atol=1e-3)

    print("KERNEL_OK")
</pallas_src>

<mosaic_0001>
module attributes {stable_mosaic.version = 11 : i64} {
  func.func @regressor_kernel(%arg0: i32, %arg1: memref<2xf32, #tpu.memory_space<smem>>, %arg2: memref<2x2x1296xf32, #tpu.memory_space<vmem>>, %arg3: memref<16x1296xf32, #tpu.memory_space<vmem>>, %arg4: memref<2x16xf32, #tpu.memory_space<vmem>>, %arg5: memref<1x2xf32, #tpu.memory_space<vmem>>) attributes {dimension_semantics = [#tpu.dimension_semantics<parallel>], iteration_bounds = array<i64: 1>, scalar_prefetch = 0 : i64, scratch_operands = 0 : i64, tpu.core_type = #tpu.core_type<tc>, window_params = [{transform_indices = @transform_0, window_bounds = array<i64: 2>}, {transform_indices = @transform_1, window_bounds = array<i64: 2, 2, 1296>}, {pipeline_mode = #tpu.pipeline_mode<synchronous>, transform_indices = @transform_2, window_bounds = array<i64: 16, 1296>}, {pipeline_mode = #tpu.pipeline_mode<synchronous>, transform_indices = @transform_3, window_bounds = array<i64: 2, 16>}, {transform_indices = @transform_4, window_bounds = array<i64: 1, 2>}]} {
    %c0 = arith.constant 0 : index
    %0 = memref.load %arg1[%c0] : memref<2xf32, #tpu.memory_space<smem>>
    %c1 = arith.constant 1 : index
    %1 = memref.load %arg1[%c1] : memref<2xf32, #tpu.memory_space<smem>>
    %c0_0 = arith.constant 0 : index
    %c0_1 = arith.constant 0 : index
    %c0_2 = arith.constant 0 : index
    %2 = vector.load %arg2[%c0_0, %c0_1, %c0_2] : memref<2x2x1296xf32, #tpu.memory_space<vmem>>, vector<1x2x1296xf32>
    %3 = vector.shape_cast %2 : vector<1x2x1296xf32> to vector<2x1296xf32>
    %c1_3 = arith.constant 1 : index
    %c0_4 = arith.constant 0 : index
    %c0_5 = arith.constant 0 : index
    %4 = vector.load %arg2[%c1_3, %c0_4, %c0_5] : memref<2x2x1296xf32, #tpu.memory_space<vmem>>, vector<1x2x1296xf32>
    %5 = vector.shape_cast %4 : vector<1x2x1296xf32> to vector<2x1296xf32>
    %6 = vector.broadcast %0 : f32 to vector<2x1296xf32>
    %7 = arith.mulf %6, %5 : vector<2x1296xf32>
    %8 = arith.addf %3, %7 : vector<2x1296xf32>
    %c0_6 = arith.constant 0 : index
    %c0_7 = arith.constant 0 : index
    %9 = vector.load %arg3[%c0_6, %c0_7] : memref<16x1296xf32, #tpu.memory_space<vmem>>, vector<16x1296xf32>
    %cst = arith.constant dense<0.000000e+00> : vector<2x16xf32>
    %10 = tpu.matmul %8, %9, %cst {dimension_numbers = #tpu.dot_dimension_numbers<[1], [1], [0], [0], [0, 0, 1, 0], [], []>} : vector<2x1296xf32>, vector<16x1296xf32>, vector<2x16xf32> -> vector<2x16xf32>
    %c0_8 = arith.constant 0 : index
    %c0_9 = arith.constant 0 : index
    %11 = vector.load %arg4[%c0_8, %c0_9] : memref<2x16xf32, #tpu.memory_space<vmem>>, vector<1x16xf32>
    %12 = vector.broadcast %11 : vector<1x16xf32> to vector<2x16xf32>
    %13 = arith.addf %10, %12 : vector<2x16xf32>
    %cst_10 = arith.constant 0.000000e+00 : f32
    %14 = vector.broadcast %cst_10 : f32 to vector<2x16xf32>
    %15 = arith.cmpf oge, %13, %14 : vector<2x16xf32>
    %cst_11 = arith.constant 0.00999999977 : f32
    %16 = vector.broadcast %cst_11 : f32 to vector<2x16xf32>
    %17 = arith.mulf %16, %13 : vector<2x16xf32>
    %18 = arith.select %15, %13, %17 : vector<2x16xi1>, vector<2x16xf32>
    %c1_12 = arith.constant 1 : index
    %c0_13 = arith.constant 0 : index
    %19 = vector.load %arg4[%c1_12, %c0_13] : memref<2x16xf32, #tpu.memory_space<vmem>>, vector<1x16xf32>
    %cst_14 = arith.constant dense<0.000000e+00> : vector<1x2xf32>
    %20 = tpu.matmul %19, %18, %cst_14 {dimension_numbers = #tpu.dot_dimension_numbers<[1], [1], [0], [0], [0, 0, 1, 0], [], []>} : vector<1x16xf32>, vector<2x16xf32>, vector<1x2xf32> -> vector<1x2xf32>
    %21 = vector.broadcast %1 : f32 to vector<1x2xf32>
    %22 = arith.addf %20, %21 : vector<1x2xf32>
    %c0_15 = arith.constant 0 : index
    %c0_16 = arith.constant 0 : index
    %23 = vector.load %arg5[%c0_15, %c0_16] : memref<1x2xf32, #tpu.memory_space<vmem>>, vector<1x2xf32>
    tpu.vector_store %arg5[%c0_15, %c0_16], %22 {strides = array<i32>} : memref<1x2xf32, #tpu.memory_space<vmem>>, vector<1x2xf32>,
    return
  }
  func.func @transform_0(%arg0: i32) -> i32 {
    %c0_i32 = arith.constant 0 : i32
    %c0_i32_0 = arith.constant 0 : i32
    return %c0_i32 : i32
  }
  func.func @transform_1(%arg0: i32) -> (i32, i32, i32) {
    %c0_i32 = arith.constant 0 : i32
    %c0_i32_0 = arith.constant 0 : i32
    %c0_i32_1 = arith.constant 0 : i32
    return %c0_i32, %arg0, %c0_i32_0 : i32, i32, i32
  }
  func.func @transform_2(%arg0: i32) -> (i32, i32) {
    %c0_i32 = arith.constant 0 : i32
    %c0_i32_0 = arith.constant 0 : i32
    %c0_i32_1 = arith.constant 0 : i32
    return %c0_i32, %c0_i32_0 : i32, i32
  }
  func.func @transform_3(%arg0: i32) -> (i32, i32) {
    %c0_i32 = arith.constant 0 : i32
    %c0_i32_0 = arith.constant 0 : i32
    %c0_i32_1 = arith.constant 0 : i32
    return %c0_i32, %c0_i32_0 : i32, i32
  }
  func.func @transform_4(%arg0: i32) -> (i32, i32) {
    %c0_i32 = arith.constant 0 : i32
    %c0_i32_0 = arith.constant 0 : i32
    return %c0_i32, %arg0 : i32, i32
  }
}

</mosaic_0001>

<bundles_post_ra>
// kernel: tpu_custom_call.1
= control target key start
LH: loop header
LB: loop body
LE: loop exit
PB: predicated region body
PF: predicated region fallthrough
CT: control target
= control target key end

     0   :  { %9 = vsyncpa [#allocation5], 0  ;;  %s575_s0 = inlined_call_operand.hbm [shape: f32[2], index: 0, kind: input, shape index: {}]   ;;  %s576_s1 = inlined_call_operand.hbm [shape: f32[2,2,1296], index: 1, kind: input, shape index: {}]   ;;  %s577_s2 = inlined_call_operand.hbm [shape: f32[16,1296], index: 2, kind: input, shape index: {}]   ;;  %s578_s3 = inlined_call_operand.vmem [shape: f32[2,16], index: 3, kind: input, shape index: {}]   ;;  %s579_s4 = inlined_call_operand.hbm [shape: f32[1,2], index: 4, kind: output, shape index: {}]  }
   0x1   :  { %10 = vsyncpa [#allocation3], 0 }
   0x2   :  { %11 = vsyncpa [#allocation8], 0 }
   0x3   :  { %12 = vsyncpa [#allocation4], 0  ;;  %s18_s17 = sshll.u32 %s575_s0, 4  ;;  %s26_s20 = sshll.u32 %s576_s1, 4  ;;  %s19_s17 = int_to_ptr.hbm [resolvable:$true] %s18_s17  ;;  %s27_s20 = int_to_ptr.hbm [resolvable:$true] %s26_s20 }
   0x4   :  { %s519_s21 = smov [#allocation2]   ;;  %s520_s22 = smov [#allocation6]  }
   0x5   :  { %21 = dma.hbm_to_smem %s19_s17, 16, %s519_s21, [#allocation5]  }
   0x6   :  { %s28_s23 = sshll.u32 %s520_s22, 4  ;;  %s521_s24 = smov 352   ;;  %s29_s23 = int_to_ptr.vmem [resolvable:$true] %s28_s23 }
   0x7   :  { %s522_s25 = smov 22   ;;  %s39_s28 = sshll.u32 %s577_s2, 4  ;;  %s40_s28 = int_to_ptr.hbm [resolvable:$true] %s39_s28 }
   0x8   :  { %34 = dma.hbm_to_vmem [thread:$0]  %s27_s20, 704, %s29_s23, [#allocation3], %s521_s24, %s521_s24, %s522_s25  }
   0x9   :  { %s523_s0 = smov [#allocation7]   ;;  %s524_s30 = smov 1408  }
   0xa   :  { %s41_s29 = sshll.u32 %s523_s0, 4  ;;  %s525_s5 = smov 88   ;;  %s42_s29 = int_to_ptr.vmem [resolvable:$true] %s41_s29 }
   0xb   :  { %47 = dma.hbm_to_vmem [thread:$0]  %s40_s28, 2816, %s42_s29, [#allocation8], %s524_s30, %s524_s30, %s525_s5  }
   0xc   :  { %511 = dma.done.wait [#allocation5], 16  }
   0xd   :  { %512 = vsyncadd [#allocation5], 4294967280 }
   0xe   :  { %513 = dma.done.wait [#allocation3], 704  }
   0xf   :  { %514 = vsyncadd [#allocation3], 4294966592 }
  0x10   :  { %515 = dma.done.wait [#allocation8], 2816  }
  0x11   :  { %516 = vsyncadd [#allocation8], 4294964480 }
  0x12   :  { %62 = sfence }
  0x13   :  { %v92_v0 = vld [vmem:[#allocation7 + $0x68] sm:$0xff]  ;;  %v90_v1 = vld [vmem:[#allocation7 + $0x58] sm:$0xff]  ;;  %v93_v2 = vld [vmem:[#allocation7 + $0x70] sm:$0xff]  ;;  %s63_s1 = sld [smem:[#allocation2]]  ;;  %vm131_vm0 = vcmask 130048   ;;  %s526_s10 = smov [#allocation9]  }
  0x14   :  { %194 = vmatpush.xpose.msra.mxu2 %v92_v0  ;;  %154 = vmatpush.xpose.msra.mxu0 %v90_v1  ;;  %v91_v3 = vld [vmem:[#allocation7 + $0x60] sm:$0xff]  ;;  %v81_v4 = vld [vmem:[#allocation7 + $0x10] sm:$0xff]  ;;  %v82_v6 = vld [vmem:[#allocation7 + $0x18] sm:$0xff]  ;;  %s412_s9 = sld [smem:[#allocation2 + $0x1]]  ;;  %s398_s11 = sshll.u32 %s526_s10, 4  ;;  %vm391_vm2 = vcmask 8192   ;;  %s399_s11 = int_to_ptr.vmem [resolvable:$true] %s398_s11 }
  0x15   :  { %214 = vmatpush.xpose.msra.mxu3 %v93_v2  ;;  %174 = vmatpush.xpose.msra.mxu1 %v91_v3  ;;  %v79_v5 = vld [vmem:[#allocation7] sm:$0xff]  ;;  %v80_v7 = vld [vmem:[#allocation7 + $0x8] sm:$0xff]  ;;  %v94_v10 = vld [vmem:[#allocation7 + $0x78] sm:$0xff]  ;;  %s400_s14 = sshll.u32 %s579_s4, 4  ;;  %s401_s14 = int_to_ptr.hbm [resolvable:$true] %s400_s14 }
  0x16   :  { %v69_v8 = vld [vmem:[#allocation6 + $0x16] sm:$0xff]  ;;  %v95_v12 = vld [vmem:[#allocation7 + $0x80] sm:$0xff]  ;;  %v65_v13 = vld [vmem:[#allocation6] sm:$0xff] }
  0x17   :  { %v96_v9 = vld [vmem:[#allocation7 + $0x88] sm:$0xff]  ;;  %v97_v11 = vld [vmem:[#allocation7 + $0x90] sm:$0xff]  ;;  %v66_v15 = vld [vmem:[#allocation6 + $0x8] sm:$0xff] }
  0x18   :  { %195 = vmatpush.xpose.msra.mxu2 %v81_v4  ;;  %155 = vmatpush.xpose.msra.mxu0 %v79_v5  ;;  %v70_v16 = vld [vmem:[#allocation6 + $0x1e] sm:$0xff]  ;;  %v71_v19 = vld [vmem:[#allocation6 + $0x26] sm:$0x3f]  ;;  %v83_v21 = vld [vmem:[#allocation7 + $0x20] sm:$0xff] }
  0x19   :  { %215 = vmatpush.xpose.msra.mxu3 %v82_v6  ;;  %v72_v14 = vstv %s63_s1  ;;  %175 = vmatpush.xpose.msra.mxu1 %v80_v7  ;;  %v85_v20 = vld [vmem:[#allocation7 + $0x30] sm:$0xff]  ;;  %v86_v23 = vld [vmem:[#allocation7 + $0x38] sm:$0xff]  ;;  %v84_v25 = vld [vmem:[#allocation7 + $0x28] sm:$0xff] }
  0x1a   :  { %v73_v17 = vmul.f32 %v72_v14, %v69_v8  ;;  %v74_v18 = vmul.f32 %v72_v14, %v70_v16  ;;  %v75_v26 = vmul.f32 %v72_v14, %v71_v19  ;;  %v67_v27 = vld [vmem:[#allocation6 + $0x10] sm:$0x3f]  ;;  %v98_v30 = vld [vmem:[#allocation7 + $0x98] sm:$0xff]  ;;  %v89_v36 = vld [vmem:[#allocation7 + $0x50] sm:$0xff]  ;;  %v364_v8 = vstv %s412_s9 }
  0x1b   :  { %v100_v29 = vld [vmem:[#allocation7 + $0xa8] sm:$0xff]  ;;  %v99_v31 = vld [vmem:[#allocation7 + $0xa0] sm:$0xff] }
  0x1c   :  { %274 = vmatpush.xpose.msrb.mxu2 %v96_v9  ;;  %234 = vmatpush.xpose.msrb.mxu0 %v94_v10  ;;  %v76_v22 = vadd.f32 %v73_v17, %v65_v13  ;;  %v77_v24 = vadd.f32 %v74_v18, %v66_v15  ;;  %v78_v28 = vadd.f32 %v75_v26, %v67_v27  ;;  %v87_v37 = vld [vmem:[#allocation7 + $0x40] sm:$0xff]  ;;  %v88_v38 = vld [vmem:[#allocation7 + $0x48] sm:$0xff] }
  0x1d   :  { %294 = vmatpush.xpose.msrb.mxu3 %v97_v11  ;;  %254 = vmatpush.xpose.msrb.mxu1 %v95_v12  ;;  %v426_v46 = vld [vmem:[%s578_s3] ss:$0 sm:$0xff]  ;;  %v363_v7 = vld [vmem:[%s578_s3 + $0x1] sm:$0x1] }
  0x1e   :  { %106 = vst [vmem:[#allocation1] ss:$4 sm:$0xff] %v76_v22 }
  0x1f   :  { %108 = vst [vmem:[#allocation1 + $0x20] ss:$4 sm:$0xff] %v77_v24 }
  0x20   :  { %275 = vmatpush.xpose.msrb.mxu2 %v85_v20  ;;  %235 = vmatpush.xpose.msrb.mxu0 %v83_v21 }
  0x21   :  { %295 = vmatpush.xpose.msrb.mxu3 %v86_v23  ;;  %255 = vmatpush.xpose.msrb.mxu1 %v84_v25 }
  0x25   :  { %v111_v32 = vld.sshfl [vmem:[#allocation1 + $0x10] sm:$0xff pattern:$0x73625140]  ;;  %v109_v33 = vld.sshfl [vmem:[#allocation1] sm:$0xff pattern:$0x73625140] }
  0x26   :  { %196 = vmatmul.f32.vlgmr.msra.gmra.mxu2 %v111_v32  ;;  %156 = vmatmul.f32.vlgmr.msra.gmra.mxu0 %v109_v33  ;;  %v112_v34 = vld.sshfl [vmem:[#allocation1 + $0x18] sm:$0xff pattern:$0x73625140]  ;;  %v110_v35 = vld.sshfl [vmem:[#allocation1 + $0x8] sm:$0xff pattern:$0x73625140] }
  0x27   :  { %216 = vmatmul.f32.vlgmr.msra.gmra.mxu3 %v112_v34  ;;  %117 = vst [vmem:[#allocation1] ss:$4 sm:$0xff] %v78_v28  ;;  %176 = vmatmul.f32.vlgmr.msra.gmra.mxu1 %v110_v35  ;;  %v115_v39 = vld.sshfl [vmem:[#allocation1 + $0x30] sm:$0xff pattern:$0x73625140] }
  0x28   :  { %413 = vmatpush.xpose.msk.msra.mxu2 %vm131_vm0, %v100_v29  ;;  %314 = vmatpush.xpose.msra.mxu0 %v98_v30  ;;  %v113_v40 = vld.sshfl [vmem:[#allocation1 + $0x20] sm:$0xff pattern:$0x73625140]  ;;  %v116_v41 = vld.sshfl [vmem:[#allocation1 + $0x38] sm:$0xff pattern:$0x73625140] }
  0x29   :  { %334 = vmatpush.xpose.msra.mxu1 %v99_v31  ;;  %v114_v42 = vld.sshfl [vmem:[#allocation1 + $0x28] sm:$0xff pattern:$0x73625140] }
  0x2c   :  { %414 = vmatpush.xpose.msk.msra.mxu2 %vm131_vm0, %v89_v36  ;;  %315 = vmatpush.xpose.msra.mxu0 %v87_v37 }
  0x2d   :  { %335 = vmatpush.xpose.msra.mxu1 %v88_v38 }
  0x2e   :  { %276 = vmatmul.f32.vlgmr.msrb.gmra.mxu2 %v115_v39  ;;  %236 = vmatmul.f32.vlgmr.msrb.gmra.mxu0 %v113_v40  ;;  %v120_v43 = vld.sshfl [vmem:[#allocation1 + $0x10] sm:$0xff pattern:$0x73625140]  ;;  %v118_v44 = vld.sshfl [vmem:[#allocation1] sm:$0xff pattern:$0x73625140] }
  0x2f   :  { %296 = vmatmul.f32.vlgmr.msrb.gmra.mxu3 %v116_v41  ;;  %256 = vmatmul.f32.vlgmr.msrb.gmra.mxu1 %v114_v42  ;;  %v119_v45 = vld.sshfl [vmem:[#allocation1 + $0x8] sm:$0xff pattern:$0x73625140] }
  0x36   :  { %415 = vmatmul.msk.f32.vlgmr.msra.gmra.mxu2 %vm131_vm0, %v120_v43  ;;  %316 = vmatmul.f32.vlgmr.msra.gmra.mxu0 %v118_v44 }
  0x37   :  { %336 = vmatmul.f32.vlgmr.msra.gmra.mxu1 %v119_v45 }
  0xa3   :  { %v157_v47 = vpop.f32.mrf.mxu0 }
  0xa4   :  { %v158_v48 = vadd.f32 %v426_v46, %v157_v47  ;;  %v177_v49 = vpop.f32.mrf.mxu1 }
  0xa6   :  { %v178_v50 = vadd.f32 %v177_v49, %v158_v48 }
  0xa9   :  { %v197_v51 = vpop.f32.mrf.mxu2 }
  0xaa   :  { %v198_v52 = vadd.f32 %v197_v51, %v178_v50  ;;  %v217_v53 = vpop.f32.mrf.mxu3 }
  0xab   :  { %v237_v54 = vpop.f32.mrf.mxu0 }
  0xac   :  { %v218_v55 = vadd.f32 %v217_v53, %v198_v52  ;;  %v257_v56 = vpop.f32.mrf.mxu1 }
  0xae   :  { %v238_v57 = vadd.f32 %v237_v54, %v218_v55 }
  0xb0   :  { %v258_v58 = vadd.f32 %v257_v56, %v238_v57 }
  0xb1   :  { %v277_v59 = vpop.f32.mrf.mxu2 }
  0xb2   :  { %v278_v60 = vadd.f32 %v277_v59, %v258_v58  ;;  %v297_v61 = vpop.f32.mrf.mxu3 }
  0xb3   :  { %v317_v62 = vpop.f32.mrf.mxu0 }
  0xb4   :  { %v298_v63 = vadd.f32 %v297_v61, %v278_v60  ;;  %v337_v0 = vpop.f32.mrf.mxu1 }
  0xb6   :  { %v318_v1 = vadd.f32 %v317_v62, %v298_v63 }
  0xb8   :  { %v338_v2 = vadd.f32 %v337_v0, %v318_v1 }
  0xb9   :  { %v357_v3 = vpop.f32.mrf.mxu2 }
  0xba   :  { %v358_v4 = vadd.f32 %v357_v3, %v338_v2 }
  0xbc   :  { %vm360_vm1 = vcmp.ge.f32.partialorder %v358_v4, 0.0  ;;  %v361_v5 = vmul.f32 0.01, %v358_v4 }
  0xbe   :  { %v362_v6 = vsel %vm360_vm1, %v358_v4, %v361_v5 }
  0xbf   :  { %416 = vmatpush.xpose.msk.msra.mxu3 %vm131_vm0, %v362_v6 }
  0xc2   :  { %417 = vmatmul.msk.f32.vlgmr.msra.gmra.mxu3 %vm131_vm0, %v363_v7 }
 0x145   :  { %v388_v9 = vpop.f32.mrf.mxu3 }
 0x146   :  { %v389_v10 = vadd.f32 %v388_v9, %v364_v8 }
 0x148   :  { %392 = vst.msk [vmem:[#allocation9] sm:$0x1] %vm391_vm2, %v389_v10 }
 0x149   :  { %403 = dma.vmem_to_hbm [thread:$0]  %s399_s11, 16, %s401_s14, [#allocation4]  }
 0x14a   :  { %517 = dma.done.wait [#allocation4], 16  }
 0x14b   :  { %518 = vsyncadd [#allocation4], 4294967280 }
 0x14c   :  { %408 = vsyncpa [#allocation3], 1 }
 0x14d   :  { %409 = vsyncpa [#allocation8], 1 }
 0x14e   :  { %410 = vsyncpa [#allocation4], 1 }
 0x14f   :  { %411 = vsyncpa [#allocation5], 1 }

</bundles_post_ra>
